<compile_context>
chip_gen: v6e
topology: v6e:2x2x1
jax: 0.10.0
libtpu: 0.0.40
codegen_flags: <defaults>
</compile_context>

<pallas_src>
import jax
import jax.numpy as jnp
from jax.experimental import pallas as pl
from jax.experimental.pallas import tpu as pltpu

FEAT_DIM = 384
HIDDEN_DIM = 768
OUTPUT_DIM = 128   # output_dim of the classifier (synthetic, lane-aligned choice)
LN_EPS = 1e-6
MAX_TM = 512       # batch-tile cap (VMEM-safe on v5e's 16 MiB scoped default)
SMALL_C = 16       # below this, backbone projection runs on the VPU (unrolled)


def classifier_kernel(pooled_ref, wb_ref, weff_ref, beff_ref, o_ref):
    # --- backbone stand-in projection: (TM, C) @ (C, 384) ---
    pooled = pooled_ref[...]                      # (TM, C) f32
    wb = wb_ref[...]                              # (C, 384) f32
    C = pooled.shape[-1]
    if C <= SMALL_C:
        # K is tiny: unrolled VPU broadcast multiply-adds (f32), MXU stays free.
        feat = pooled[:, 0:1] * wb[0:1, :]
        for c in range(1, C):
            feat = feat + pooled[:, c:c + 1] * wb[c:c + 1, :]
    else:
        # Larger C: bf16 MXU matmul with f32 accumulation (no f32 emulation).
        feat = jnp.dot(pooled.astype(jnp.bfloat16), wb.astype(jnp.bfloat16),
                       preferred_element_type=jnp.float32)

    # --- LayerNorm(384) statistics in f32; affine folded into the head ---
    mean = jnp.mean(feat, axis=-1, keepdims=True)
    centered = feat - mean
    var = jnp.mean(centered * centered, axis=-1, keepdims=True)
    xn = centered * jax.lax.rsqrt(var + LN_EPS)

    # --- folded classifier head: (TM,384)@(384,OUT) bf16 MXU, f32 accumulate ---
    out = jnp.dot(xn.astype(jnp.bfloat16), weff_ref[...],
                  preferred_element_type=jnp.float32) + beff_ref[...]

    o_ref[...] = out.astype(o_ref.dtype)


def _round_up(x, m):
    return ((x + m - 1) // m) * m


def _pick_tile(B, max_tm=MAX_TM):
    """8-aligned batch tile; tiny batches pad to 8, large batches get >=2 tiles."""
    if B <= max_tm:
        return _round_up(B, 8)
    n_tiles = pl.cdiv(B, max_tm)                  # >= 2
    return _round_up(pl.cdiv(B, n_tiles), 8)


def classifier_forward(pooled, w_backbone, w_eff, b_eff, out_dtype):
    B, C = pooled.shape
    tm = _pick_tile(B)
    pad_b = (-B) % tm
    if pad_b:
        pooled = jnp.pad(pooled, ((0, pad_b), (0, 0)))
    Bp = B + pad_b

    out = pl.pallas_call(
        classifier_kernel,
        out_shape=jax.ShapeDtypeStruct((Bp, OUTPUT_DIM), out_dtype),
        grid=(Bp // tm,),
        in_specs=[
            pl.BlockSpec((tm, C), lambda i: (i, 0)),                # pooled tile
            pl.BlockSpec((C, FEAT_DIM), lambda i: (0, 0)),          # w_backbone (resident, f32)
            pl.BlockSpec((FEAT_DIM, OUTPUT_DIM), lambda i: (0, 0)),  # folded weight (resident, bf16)
            pl.BlockSpec((1, OUTPUT_DIM), lambda i: (0, 0)),        # folded bias (f32)
        ],
        out_specs=pl.BlockSpec((tm, OUTPUT_DIM), lambda i: (i, 0)),
        compiler_params=pltpu.CompilerParams(
            dimension_semantics=("parallel",)),
    )(pooled, w_backbone, w_eff, b_eff)
    return out[:B]


def make_params(key, in_channels):
    ks = jax.random.split(key, 5)
    scale = 0.02
    # TODO(synk): the real backbone (`model.forward_features`) is external and
    # unspecified; a deterministic mean-pool + linear projection stand-in is used.
    w_backbone = scale * jax.random.normal(ks[0], (in_channels, FEAT_DIM), jnp.float32)
    gamma = jnp.ones((1, FEAT_DIM), jnp.float32)
    beta = jnp.zeros((1, FEAT_DIM), jnp.float32)
    w1 = scale * jax.random.normal(ks[1], (FEAT_DIM, HIDDEN_DIM), jnp.float32)
    b1 = scale * jax.random.normal(ks[2], (1, HIDDEN_DIM), jnp.float32)
    w2 = scale * jax.random.normal(ks[3], (HIDDEN_DIM, OUTPUT_DIM), jnp.float32)
    b2 = scale * jax.random.normal(ks[4], (1, OUTPUT_DIM), jnp.float32)

    # --- one-time head fold (hoisted out of the per-call forward path) ---
    # Linear(384,768) -> Linear(768,OUT) has no nonlinearity between them, and
    # the LayerNorm affine is a per-feature scale+shift, so both fold exactly
    # (up to float rounding) into a single (384, OUT) matmul:
    #   y = (xn * gamma + beta) @ (w1 @ w2) + b1 @ w2 + b2
    #     = xn @ (diag(gamma) @ w1 @ w2) + (beta @ w1 @ w2 + b1 @ w2 + b2)
    w_head = w1 @ w2                                           # f32, (384, OUT)
    w_eff = (gamma.reshape(-1, 1) * w_head).astype(jnp.bfloat16)
    b_eff = beta @ w_head + b1 @ w2 + b2                       # f32, (1, OUT)

    return dict(w_backbone=w_backbone, gamma=gamma, beta=beta,
                w1=w1, b1=b1, w2=w2, b2=b2,
                w_eff=w_eff, b_eff=b_eff)


def custom_classifier_forward(img, params):
    pdtype = img.dtype
    # Backbone stand-in pooling (NCHW -> (B, C)); projection happens in-kernel.
    # TODO(synk): could fuse the mean-pool into the pallas_call input stage via
    # allow_input_fusion; kept as a plain XLA reduce here (tiny at C=4).
    pooled = jnp.mean(img, axis=(2, 3)).astype(jnp.float32)
    return classifier_forward(pooled, params["w_backbone"],
                              params["w_eff"], params["b_eff"], pdtype)


if __name__ == "__main__":
    key = jax.random.PRNGKey(0)
    k_img, k_par = jax.random.split(key)
    B, C, H, W = 2, 4, 16, 16
    img = jax.random.normal(k_img, (B, C, H, W), jnp.float32)
    params = make_params(k_par, C)

    out = custom_classifier_forward(img, params)
    out = jax.block_until_ready(out)
    assert out.shape == (B, OUTPUT_DIM), out.shape

    # --- reference 1: matched precision (folded affine+head, bf16 matmul inputs) ---
    pooled = jnp.mean(img, axis=(2, 3))
    feat = pooled @ params["w_backbone"]
    mu = jnp.mean(feat, axis=-1, keepdims=True)
    var = jnp.mean((feat - mu) ** 2, axis=-1, keepdims=True)
    xn_pre = (feat - mu) * jax.lax.rsqrt(var + LN_EPS)          # pre-affine
    w_eff_ref = params["w_eff"].astype(jnp.float32)
    ref_matched = (xn_pre.astype(jnp.bfloat16).astype(jnp.float32) @ w_eff_ref
                   + params["b_eff"])
    assert jnp.allclose(out, ref_matched, atol=5e-3, rtol=5e-3)

    # --- reference 2: full-f32 unfolded module semantics (loose, bf16 rounding) ---
    xn = xn_pre * params["gamma"] + params["beta"]
    ref_full = (xn @ params["w1"] + params["b1"]) @ params["w2"] + params["b2"]
    assert jnp.allclose(out, ref_full, atol=2e-2, rtol=2e-2)

    print("KERNEL_OK")
</pallas_src>

<mosaic_0001>
module attributes {stable_mosaic.version = 11 : i64} {
  func.func @classifier_kernel(%arg0: i32, %arg1: memref<8x4xf32, #tpu.memory_space<vmem>>, %arg2: memref<4x384xf32, #tpu.memory_space<vmem>>, %arg3: memref<384x128xbf16, #tpu.memory_space<vmem>>, %arg4: memref<1x128xf32, #tpu.memory_space<vmem>>, %arg5: memref<8x128xf32, #tpu.memory_space<vmem>>) attributes {dimension_semantics = [#tpu.dimension_semantics<parallel>], iteration_bounds = array<i64: 1>, scalar_prefetch = 0 : i64, scratch_operands = 0 : i64, tpu.core_type = #tpu.core_type<tc>, window_params = [{transform_indices = @transform_0, window_bounds = array<i64: 8, 4>}, {pipeline_mode = #tpu.pipeline_mode<synchronous>, transform_indices = @transform_1, window_bounds = array<i64: 4, 384>}, {pipeline_mode = #tpu.pipeline_mode<synchronous>, transform_indices = @transform_2, window_bounds = array<i64: 384, 128>}, {pipeline_mode = #tpu.pipeline_mode<synchronous>, transform_indices = @transform_3, window_bounds = array<i64: 1, 128>}, {transform_indices = @transform_4, window_bounds = array<i64: 8, 128>}]} {
    %c0 = arith.constant 0 : index
    %c0_0 = arith.constant 0 : index
    %0 = vector.load %arg1[%c0, %c0_0] : memref<8x4xf32, #tpu.memory_space<vmem>>, vector<8x4xf32>
    %c0_1 = arith.constant 0 : index
    %c0_2 = arith.constant 0 : index
    %1 = vector.load %arg2[%c0_1, %c0_2] : memref<4x384xf32, #tpu.memory_space<vmem>>, vector<4x384xf32>
    %2 = vector.extract_strided_slice %0 {offsets = [0, 0], sizes = [8, 1], strides = [1, 1]} : vector<8x4xf32> to vector<8x1xf32>
    %3 = vector.extract_strided_slice %1 {offsets = [0, 0], sizes = [1, 384], strides = [1, 1]} : vector<4x384xf32> to vector<1x384xf32>
    %4 = vector.broadcast %2 : vector<8x1xf32> to vector<8x384xf32>
    %5 = vector.broadcast %3 : vector<1x384xf32> to vector<8x384xf32>
    %6 = arith.mulf %4, %5 : vector<8x384xf32>
    %7 = vector.extract_strided_slice %0 {offsets = [0, 1], sizes = [8, 1], strides = [1, 1]} : vector<8x4xf32> to vector<8x1xf32>
    %8 = vector.extract_strided_slice %1 {offsets = [1, 0], sizes = [1, 384], strides = [1, 1]} : vector<4x384xf32> to vector<1x384xf32>
    %9 = vector.broadcast %7 : vector<8x1xf32> to vector<8x384xf32>
    %10 = vector.broadcast %8 : vector<1x384xf32> to vector<8x384xf32>
    %11 = arith.mulf %9, %10 : vector<8x384xf32>
    %12 = arith.addf %6, %11 : vector<8x384xf32>
    %13 = vector.extract_strided_slice %0 {offsets = [0, 2], sizes = [8, 1], strides = [1, 1]} : vector<8x4xf32> to vector<8x1xf32>
    %14 = vector.extract_strided_slice %1 {offsets = [2, 0], sizes = [1, 384], strides = [1, 1]} : vector<4x384xf32> to vector<1x384xf32>
    %15 = vector.broadcast %13 : vector<8x1xf32> to vector<8x384xf32>
    %16 = vector.broadcast %14 : vector<1x384xf32> to vector<8x384xf32>
    %17 = arith.mulf %15, %16 : vector<8x384xf32>
    %18 = arith.addf %12, %17 : vector<8x384xf32>
    %19 = vector.extract_strided_slice %0 {offsets = [0, 3], sizes = [8, 1], strides = [1, 1]} : vector<8x4xf32> to vector<8x1xf32>
    %20 = vector.extract_strided_slice %1 {offsets = [3, 0], sizes = [1, 384], strides = [1, 1]} : vector<4x384xf32> to vector<1x384xf32>
    %21 = vector.broadcast %19 : vector<8x1xf32> to vector<8x384xf32>
    %22 = vector.broadcast %20 : vector<1x384xf32> to vector<8x384xf32>
    %23 = arith.mulf %21, %22 : vector<8x384xf32>
    %24 = arith.addf %18, %23 : vector<8x384xf32>
    %cst = arith.constant dense<0.000000e+00> : vector<8xf32>
    %25 = vector.multi_reduction <add>, %24, %cst [1] : vector<8x384xf32> to vector<8xf32>
    %26 = vector.shape_cast %25 : vector<8xf32> to vector<8x1xf32>
    %cst_3 = arith.constant 3.840000e+02 : f32
    %27 = vector.broadcast %cst_3 : f32 to vector<8x1xf32>
    %28 = arith.divf %26, %27 : vector<8x1xf32>
    %29 = vector.broadcast %28 : vector<8x1xf32> to vector<8x384xf32>
    %30 = arith.subf %24, %29 : vector<8x384xf32>
    %31 = arith.mulf %30, %30 : vector<8x384xf32>
    %cst_4 = arith.constant dense<0.000000e+00> : vector<8xf32>
    %32 = vector.multi_reduction <add>, %31, %cst_4 [1] : vector<8x384xf32> to vector<8xf32>
    %33 = vector.shape_cast %32 : vector<8xf32> to vector<8x1xf32>
    %cst_5 = arith.constant 3.840000e+02 : f32
    %34 = vector.broadcast %cst_5 : f32 to vector<8x1xf32>
    %35 = arith.divf %33, %34 : vector<8x1xf32>
    %cst_6 = arith.constant 9.99999997E-7 : f32
    %36 = vector.broadcast %cst_6 : f32 to vector<8x1xf32>
    %37 = arith.addf %35, %36 : vector<8x1xf32>
    %38 = math.rsqrt %37 : vector<8x1xf32>
    %39 = vector.broadcast %38 : vector<8x1xf32> to vector<8x384xf32>
    %40 = arith.mulf %30, %39 : vector<8x384xf32>
    %41 = arith.truncf %40 : vector<8x384xf32> to vector<8x384xbf16>
    %c0_7 = arith.constant 0 : index
    %c0_8 = arith.constant 0 : index
    %42 = vector.load %arg3[%c0_7, %c0_8] : memref<384x128xbf16, #tpu.memory_space<vmem>>, vector<384x128xbf16>
    %cst_9 = arith.constant dense<0.000000e+00> : vector<8x128xf32>
    %43 = tpu.matmul %41, %42, %cst_9 {dimension_numbers = #tpu.dot_dimension_numbers<[1], [0], [0], [1], [0, 0, 1, 1], [], []>} : vector<8x384xbf16>, vector<384x128xbf16>, vector<8x128xf32> -> vector<8x128xf32>
    %c0_10 = arith.constant 0 : index
    %c0_11 = arith.constant 0 : index
    %44 = vector.load %arg4[%c0_10, %c0_11] : memref<1x128xf32, #tpu.memory_space<vmem>>, vector<1x128xf32>
    %45 = vector.broadcast %44 : vector<1x128xf32> to vector<8x128xf32>
    %46 = arith.addf %43, %45 : vector<8x128xf32>
    %c0_12 = arith.constant 0 : index
    %c0_13 = arith.constant 0 : index
    %47 = vector.load %arg5[%c0_12, %c0_13] : memref<8x128xf32, #tpu.memory_space<vmem>>, vector<8x128xf32>
    tpu.vector_store %arg5[%c0_12, %c0_13], %46 {strides = array<i32>} : memref<8x128xf32, #tpu.memory_space<vmem>>, vector<8x128xf32>,
    return
  }
  func.func @transform_0(%arg0: i32) -> (i32, i32) {
    %c0_i32 = arith.constant 0 : i32
    %c0_i32_0 = arith.constant 0 : i32
    return %arg0, %c0_i32 : i32, i32
  }
  func.func @transform_1(%arg0: i32) -> (i32, i32) {
    %c0_i32 = arith.constant 0 : i32
    %c0_i32_0 = arith.constant 0 : i32
    %c0_i32_1 = arith.constant 0 : i32
    return %c0_i32, %c0_i32_0 : i32, i32
  }
  func.func @transform_2(%arg0: i32) -> (i32, i32) {
    %c0_i32 = arith.constant 0 : i32
    %c0_i32_0 = arith.constant 0 : i32
    %c0_i32_1 = arith.constant 0 : i32
    return %c0_i32, %c0_i32_0 : i32, i32
  }
  func.func @transform_3(%arg0: i32) -> (i32, i32) {
    %c0_i32 = arith.constant 0 : i32
    %c0_i32_0 = arith.constant 0 : i32
    %c0_i32_1 = arith.constant 0 : i32
    return %c0_i32, %c0_i32_0 : i32, i32
  }
  func.func @transform_4(%arg0: i32) -> (i32, i32) {
    %c0_i32 = arith.constant 0 : i32
    %c0_i32_0 = arith.constant 0 : i32
    return %arg0, %c0_i32 : i32, i32
  }
}

</mosaic_0001>

<bundles_post_ra>
// kernel: tpu_custom_call.1
= control target key start
LH: loop header
LB: loop body
LE: loop exit
PB: predicated region body
PF: predicated region fallthrough
CT: control target
= control target key end

     0   :  { %9 = vsyncpa [#allocation3], 0  ;;  %s718_s0 = inlined_call_operand.vmem [shape: f32[8,4], index: 0, kind: input, shape index: {}]   ;;  %s719_s1 = inlined_call_operand.vmem [shape: f32[4,384], index: 1, kind: input, shape index: {}]   ;;  %s720_s2 = inlined_call_operand.hbm [shape: bf16[384,128], index: 2, kind: input, shape index: {}]   ;;  %s721_s3 = inlined_call_operand.vmem [shape: f32[1,128], index: 3, kind: input, shape index: {}]   ;;  %s722_s4 = inlined_call_operand.hbm [shape: f32[8,128], index: 4, kind: output, shape index: {}]  }
   0x1   :  { %10 = vsyncpa [#allocation4], 0  ;;  %s665_s15 = smov [#allocation2]  }
   0x2   :  { %s20_s16 = sshll.u32 %s665_s15, 4  ;;  %s21_s16 = int_to_ptr.vmem [resolvable:$true] %s20_s16 }
   0x3   :  { %s629_s17 = scalar_lea.vmem %s21_s16, 3072  ;;  %p634_p1 = scmp.lt.s32.totalorder %s21_s16, %s21_s16 }
   0x4   :  { %p630_p0 = scmp.ne.s32.totalorder %s21_s16, %s629_s17  ;;  %p635_p2 = scmp.lt.s32.totalorder %s629_s17, %s629_s17 }
   0x6   :  { %p636_p3 = por %p635_p2, %p634_p1 }
   0x8   :  { %p637_p4 = pnand %p636_p3, %p630_p0 }
   0xa   :  { %640 = shalt.err (!%p637_p4)
}
   0xb   :  { %s666_s18 = smov 64   ;;  %s667_s19 = smov 4  }
   0xc   :  { %26 = dma.hbm_to_vmem [thread:$0]  %s720_s2, 3072, %s21_s16, [#allocation3], %s666_s18, %s666_s18, %s667_s19  }
   0xd   :  { %661 = dma.done.wait [#allocation3], 3072  }
   0xe   :  { %662 = vsyncadd [#allocation3], 4294964224  ;;  %v668_v0 = vmov 0   ;;  %v669_v1 = vmov 2   ;;  %v33_v2 = vld [vmem:[%s718_s0] sm:$0xff]  ;;  %v670_v3 = vmov 1   ;;  %v43_v5 = vlaneseq }
   0xf   :  { %590 = vset.pattern.permute.xlu0 %v668_v0  ;;  %592 = vset.pattern.permute.xlu1 %v669_v1  ;;  %v671_v4 = vmov 3   ;;  %v34_v9 = vld [vmem:[%s719_s1] sm:$0xff]  ;;  %v35_v12 = vld [vmem:[%s719_s1 + $0x8] sm:$0xf]  ;;  %vm673_vm0 = vmmov 0   ;;  %s674_s27 = smov [#allocation5]  }
  0x10   :  { %38 = vperm.xlu0 %590, %v33_v2   ;;  %111 = vperm.xlu1 %592, %v33_v2   ;;  %v44_v6 = vshrl.u32 %v43_v5, 7  ;;  %v596_v5 = vld [vmem:[#allocation2 + $0xb8] sm:$0xff]   ;;  %s495_s28 = sshll.u32 %s674_s27, 4  ;;  %s496_s28 = int_to_ptr.vmem [resolvable:$true] %s495_s28 }
  0x11   :  { %s641_s29 = scalar_lea.vmem %s496_s28, 128  ;;  %p646_p6 = scmp.lt.s32.totalorder %s496_s28, %s496_s28 }
  0x12   :  { %v45_v7 = vsub.s32 0, %v44_v6  ;;  %v49_v8 = vsub.s32 4, %v44_v6  ;;  %v79_v10 = vsub.s32 1, %v44_v6  ;;  %v83_v11 = vsub.s32 5, %v44_v6  ;;  %p642_p5 = scmp.ne.s32.totalorder %s496_s28, %s641_s29  ;;  %p647_p7 = scmp.lt.s32.totalorder %s641_s29, %s641_s29 }
  0x13   :  { %v116_v13 = vsub.s32 2, %v44_v6  ;;  %v120_v14 = vsub.s32 6, %v44_v6  ;;  %v153_v15 = vsub.s32 3, %v44_v6  ;;  %v157_v16 = vsub.s32 7, %v44_v6  ;;  %v597_v6 = vld [vmem:[#allocation2 + $0x38] sm:$0xff]  }
  0x14   :  { %591 = vset.pattern.permute.xlu0 %v670_v3  ;;  %593 = vset.pattern.permute.xlu1 %v671_v4  ;;  %v46_v17 = vrot.slane %v34_v9, %v45_v7  ;;  %v50_v18 = vrot.slane %v34_v9, %v49_v8  ;;  %v54_v19 = vrot.slane %v35_v12, %v45_v7  ;;  %v598_v8 = vld [vmem:[#allocation2 + $0x70] sm:$0xff]   ;;  %p648_p8 = por %p647_p7, %p646_p6 }
  0x15   :  { %74 = vperm.xlu0 %591, %v33_v2   ;;  %148 = vperm.xlu1 %593, %v33_v2   ;;  %v80_v20 = vrot.slane %v34_v9, %v79_v10  ;;  %v84_v21 = vrot.slane %v34_v9, %v83_v11  ;;  %v88_v22 = vrot.slane %v35_v12, %v79_v10  ;;  %v601_v11 = vld [vmem:[#allocation2 + $0x68] sm:$0xff]  }
  0x16   :  { %v117_v23 = vrot.slane %v34_v9, %v116_v13  ;;  %v121_v24 = vrot.slane %v34_v9, %v120_v14  ;;  %v125_v25 = vrot.slane %v35_v12, %v116_v13  ;;  %v154_v26 = vrot.slane %v34_v9, %v153_v15  ;;  %p649_p9 = pnand %p648_p8, %p642_p5 }
  0x17   :  { %v158_v29 = vrot.slane %v34_v9, %v157_v16  ;;  %v61_v30 = vrot.slane %v46_v17, %v45_v7  ;;  %v65_v31 = vrot.slane %v50_v18, %v45_v7  ;;  %v162_v32 = vrot.slane %v35_v12, %v153_v15  ;;  %v599_v9 = vld [vmem:[#allocation2 + $0xb0] sm:$0xff]   ;;  %v602_v12 = vld [vmem:[#allocation2 + $0xa8] sm:$0xff]  }
  0x18   :  { %v69_v33 = vrot.slane %v54_v19, %v45_v7  ;;  %v95_v34 = vrot.slane %v80_v20, %v79_v10  ;;  %v99_v35 = vrot.slane %v84_v21, %v79_v10  ;;  %v103_v36 = vrot.slane %v88_v22, %v79_v10  ;;  %v600_v10 = vld [vmem:[#allocation2 + $0x30] sm:$0xff]  }
  0x19   :  { %594 = vset.pattern.permute.xlu0 %v671_v4  ;;  %v132_v37 = vrot.slane %v117_v23, %v116_v13  ;;  %v136_v38 = vrot.slane %v121_v24, %v116_v13  ;;  %v140_v39 = vrot.slane %v125_v25, %v116_v13  ;;  %v169_v40 = vrot.slane %v154_v26, %v153_v15  ;;  %v595_v4 = vld [vmem:[#allocation2 + $0x78] sm:$0xff]   ;;  %v603_v23 = vld [vmem:[#allocation2 + $0x28] sm:$0xff]   ;;  %v604_v24 = vld [vmem:[#allocation2 + $0x60] sm:$0xff]  }
  0x1a   :  { %v173_v41 = vrot.slane %v158_v29, %v153_v15  ;;  %v177_v45 = vrot.slane %v162_v32, %v153_v15  ;;  %v672_v7 = vmov 0.0   ;;  %529 = vmatprep.subr.bf16.mxu0 %v595_v4  ;;  %v605_v25 = vld [vmem:[#allocation2 + $0xa0] sm:$0xff]   ;;  %v609_v29 = vld [vmem:[#allocation2 + $0x18] sm:$0xff]   ;;  %v612_v32 = vld [vmem:[#allocation2 + $0x10] sm:$0xff]  }
  0x1b   :  { %560 = vmatprep.subr.bf16.mxu1 %v672_v7  ;;  %530 = vmatpush3.bf16.msra.mxu0 %v597_v6  ;;  %v606_v26 = vld [vmem:[#allocation2 + $0x20] sm:$0xff]  }
  0x1c   :  { %561 = vmatpush3.bf16.msra.mxu1 %v596_v5  ;;  %531 = vmatprep.subr.bf16.mxu0 %v598_v8 }
  0x1d   :  { %562 = vmatprep.subr.bf16.mxu1 %v672_v7  ;;  %576 = vmatprep.mubr.msk.bf16.mxu1 %vm673_vm0, %v672_v7 }
  0x1f   :  { %532 = vmatpush3.bf16.msra.mxu0 %v600_v10 }
  0x20   :  { %563 = vmatpush3.bf16.msra.mxu1 %v599_v9  ;;  %533 = vmatprep.subr.bf16.mxu0 %v601_v11 }
  0x21   :  { %564 = vmatprep.subr.bf16.mxu1 %v672_v7 }
  0x23   :  { %534 = vmatpush3.bf16.msra.mxu0 %v603_v23 }
  0x24   :  { %565 = vmatpush3.bf16.msra.mxu1 %v602_v12  ;;  %535 = vmatprep.subr.bf16.mxu0 %v604_v24 }
  0x25   :  { %566 = vmatprep.subr.bf16.mxu1 %v672_v7 }
  0x27   :  { %536 = vmatpush3.bf16.msra.mxu0 %v606_v26 }
  0x28   :  { %567 = vmatpush3.bf16.msra.mxu1 %v605_v25 }
  0x29   :  { %568 = vmatprep.subr.bf16.mxu1 %v672_v7 }
  0x8b   :  { %v39_v27 = vpop.permute.xlu0 %38  ;;  %v112_v28 = vpop.permute.xlu1 %111 }
  0x8c   :  { %v70_v42 = vmul.f32 %v61_v30, %v39_v27  ;;  %v71_v43 = vmul.f32 %v65_v31, %v39_v27  ;;  %v72_v47 = vmul.f32 %v69_v33, %v39_v27  ;;  %v141_v51 = vmul.f32 %v132_v37, %v112_v28  ;;  %v607_v27 = vld [vmem:[#allocation2 + $0x58] sm:$0xff]   ;;  %v610_v30 = vld [vmem:[#allocation2 + $0x50] sm:$0xff]   ;;  %v613_v33 = vld [vmem:[#allocation2 + $0x48] sm:$0xff]  }
  0x8d   :  { %v142_v52 = vmul.f32 %v136_v38, %v112_v28  ;;  %v143_v53 = vmul.f32 %v140_v39, %v112_v28  ;;  %v608_v28 = vld [vmem:[#allocation2 + $0x98] sm:$0xff]   ;;  %537 = vmatprep.subr.bf16.mxu0 %v607_v27  ;;  %v611_v31 = vld [vmem:[#allocation2 + $0x90] sm:$0xff]   ;;  %v617_v37 = vld [vmem:[#allocation2 + $0x80] sm:$0xff]  }
  0x8e   :  { %569 = vmatpush3.bf16.msra.mxu1 %v608_v28  ;;  %538 = vmatpush3.bf16.msra.mxu0 %v609_v29  ;;  %v618_v38 = vld [vmem:[#allocation2] sm:$0xff]  }
  0x8f   :  { %570 = vmatprep.subr.bf16.mxu1 %v672_v7  ;;  %539 = vmatprep.subr.bf16.mxu0 %v610_v30 }
  0x90   :  { %v75_v44 = vpop.permute.xlu0 %74  ;;  %v149_v46 = vpop.permute.xlu1 %148 }
  0x91   :  { %v104_v48 = vmul.f32 %v95_v34, %v75_v44  ;;  %v105_v49 = vmul.f32 %v99_v35, %v75_v44  ;;  %v106_v50 = vmul.f32 %v103_v36, %v75_v44  ;;  %v178_v54 = vmul.f32 %v169_v40, %v149_v46  ;;  %v614_v34 = vld [vmem:[#allocation2 + $0x88] sm:$0xff]   ;;  %v616_v36 = vld [vmem:[#allocation2 + $0x40] sm:$0xff]  }
  0x92   :  { %v179_v58 = vmul.f32 %v173_v41, %v149_v46  ;;  %v180_v59 = vmul.f32 %v177_v45, %v149_v46  ;;  %571 = vmatpush3.bf16.msra.mxu1 %v611_v31  ;;  %540 = vmatpush3.bf16.msra.mxu0 %v612_v32  ;;  %v615_v35 = vld [vmem:[#allocation2 + $0x8] sm:$0xff]  }
  0x93   :  { %v107_v55 = vadd.f32 %v104_v48, %v70_v42  ;;  %v108_v56 = vadd.f32 %v105_v49, %v71_v43  ;;  %v109_v57 = vadd.f32 %v106_v50, %v72_v47  ;;  %572 = vmatprep.subr.bf16.mxu1 %v672_v7  ;;  %541 = vmatprep.subr.bf16.mxu0 %v613_v33 }
  0x95   :  { %v144_v60 = vadd.f32 %v141_v51, %v107_v55  ;;  %v145_v61 = vadd.f32 %v142_v52, %v108_v56  ;;  %v146_v62 = vadd.f32 %v143_v53, %v109_v57  ;;  %v504_v52 = vld [vmem:[%s721_s3] ss:$0 sm:$0xff] }
  0x96   :  { %573 = vmatpush3.bf16.msra.mxu1 %v614_v34  ;;  %542 = vmatpush3.bf16.msra.mxu0 %v615_v35 }
  0x97   :  { %v181_v63 = vadd.f32 %v178_v54, %v144_v60  ;;  %v182_v0 = vadd.f32 %v179_v58, %v145_v61  ;;  %v183_v1 = vadd.f32 %v180_v59, %v146_v62  ;;  %574 = vmatprep.subr.bf16.mxu1 %v672_v7  ;;  %543 = vmatprep.subr.bf16.mxu0 %v616_v36 }
  0x99   :  { %v184_v2 = vadd.f32 %v182_v0, %v181_v63 }
  0x9a   :  { %575 = vmatpush3.bf16.msra.mxu1 %v617_v37  ;;  %544 = vmatpush3.bf16.msra.mxu0 %v618_v38 }
  0x9b   :  { %v185_v3 = vadd.f32 %v184_v2, %v183_v1 }
  0x9d   :  { %186 = vadd.xlane.f32.xlu1 %v185_v3 }
 0x126   :  { %v187_v13 = vpop.xlane.xlu1 %186 }
 0x127   :  { %v189_v14 = vmul.f32 0.0026041667, %v187_v13 }
 0x129   :  { %v190_v15 = vsub.f32 %v181_v63, %v189_v14  ;;  %v191_v16 = vsub.f32 %v182_v0, %v189_v14  ;;  %v192_v17 = vsub.f32 %v183_v1, %v189_v14 }
 0x12b   :  { %v193_v18 = vmul.f32 %v190_v15, %v190_v15  ;;  %v194_v19 = vmul.f32 %v191_v16, %v191_v16  ;;  %v195_v20 = vmul.f32 %v192_v17, %v192_v17 }
 0x12d   :  { %v196_v21 = vadd.f32 %v194_v19, %v193_v18 }
 0x12f   :  { %v197_v22 = vadd.f32 %v196_v21, %v195_v20 }
 0x131   :  { %198 = vadd.xlane.f32.xlu0 %v197_v22 }
 0x1ba   :  { %v199_v39 = vpop.xlane.xlu0 %198 }
 0x1bb   :  { %v200_v40 = vmul.f32 0.0026041667, %v199_v39 }
 0x1bd   :  { %v201_v41 = vadd.f32 1e-06, %v200_v40 }
 0x1bf   :  { %619 = vrsqrt.f32 %v201_v41 }
 0x1cc   :  { %v620_v42 = vpop.eup %619 }
 0x1cd   :  { %v204_v43 = vmul.f32 %v620_v42, %v191_v16  ;;  %v205_v44 = vmul.f32 %v620_v42, %v192_v17  ;;  %v203_v45 = vmul.f32 %v620_v42, %v190_v15 }
 0x1cf   :  { %v207_v46 = vpack.c.bf16 %v204_v43, %v204_v43  ;;  %v208_v47 = vpack.c.bf16 %v205_v44, %v205_v44  ;;  %v206_v48 = vpack.c.bf16 %v203_v45, %v203_v45 }
 0x1d1   :  { %440 = vmatprep.mubr.bf16.mxu0 %v207_v46  ;;  %577 = vmatmul.mubr.bf16.vlgmr.msra.gmra.mxu1 %v208_v47 }
 0x1d2   :  { %441 = vmatmul.mubr.bf16.vlgmr.msra.gmra.mxu0 %v206_v48 }
 0x291   :  { %v482_v49 = vpop.f32.mrf.mxu1 }
 0x292   :  { %v545_v50 = vpop.f32.mrf.mxu0 }
 0x293   :  { %v578_v51 = vpop.f32.mrf.mxu1 }
 0x294   :  { %v546_v53 = vpop.f32.mrf.mxu0 }
 0x295   :  { %v547_v54 = vadd.f32 %v546_v53, %v545_v50  ;;  %v485_v55 = vpop.f32.mrf.mxu1 }
 0x296   :  { %v548_v56 = vpop.f32.mrf.mxu0 }
 0x297   :  { %v443_v57 = vadd.f32 %v547_v54, %v504_v52  ;;  %v579_v58 = vpop.f32.mrf.mxu1 }
 0x298   :  { %v549_v59 = vpop.f32.mrf.mxu0 }
 0x299   :  { %v483_v60 = vadd.f32 %v482_v49, %v443_v57 }
 0x29b   :  { %488 = vst [vmem:[#allocation5] sm:$0xff] %v483_v60 }
 0x29c   :  { %652 = shalt.err (!%p649_p9)
}
 0x29d   :  { %498 = dma.vmem_to_hbm [thread:$0]  %s496_s28, 128, %s722_s4, [#allocation4]  }
 0x29e   :  { %663 = dma.done.wait [#allocation4], 128  }
 0x29f   :  { %664 = vsyncadd [#allocation4], 4294967168 }
 0x2a0   :  { %502 = vsyncpa [#allocation3], 1 }
 0x2a1   :  { %503 = vsyncpa [#allocation4], 1 }

</bundles_post_ra>
